<compile_context>
chip_gen: v5e
topology: v5e:2x2
jax: 0.10.0
libtpu: 0.0.40
codegen_flags: <defaults>
</compile_context>

<pallas_src>
import jax
import jax.numpy as jnp
import numpy as np
from jax.experimental import pallas as pl
from jax.experimental.pallas import tpu as pltpu

# ---------------- model hyper-parameters (from config) ----------------
H = 32            # number_neurons
NUM_HIDDEN = 3    # number_hidden  (=> NUM_HIDDEN+2 Linear layers, NUM_HIDDEN+1 activated)
FPAD = 128        # lane padding of the hidden feature axis
FOUT = 8          # padded output lanes (0..2 = rho, u, p)
TM_MAX = 1024     # max batch tile
TM_MIN = 128      # min batch tile

N_HIDDEN = 1.0                    # activation 'n' for hidden layers
N_RHO, N_U, N_P = 1.0, 1.0, 1.0   # activation 'n' for outputs
SLOPE_HIDDEN = 1.0                # initial trainable slopes 'a'
SLOPE_RHO, SLOPE_U, SLOPE_P = 1.0, 1.0, 1.0


# ---------------- Pallas kernel ----------------
def ga_pinn_mlp_kernel(x_ref, w_in_ref, b_in_ref, w_hid_ref, b_hid_ref,
                       w_out_ref, b_out_ref, o_ref):
    # Input layer: only 2 input features -> two lane-broadcast FMAs on the VPU
    # (cheaper and simpler than a K=2 MXU matmul). Slope already folded into w/b.
    x = x_ref[...]                                           # (TM, 2)
    h = (x[:, 0:1] * w_in_ref[0:1, :]
         + x[:, 1:2] * w_in_ref[1:2, :]
         + b_in_ref[...])                                    # (TM, FPAD)
    h = jnp.tanh(h)

    # Hidden layers (static Python unroll; NUM_HIDDEN is small).
    for i in range(NUM_HIDDEN):
        z = jnp.dot(h, w_hid_ref[i], preferred_element_type=jnp.float32)
        h = jnp.tanh(z + b_hid_ref[i])                       # slope folded into w/b

    # Final linear straight into the narrow (FOUT-lane) output.
    z = jnp.dot(h, w_out_ref[...], preferred_element_type=jnp.float32)
    z = z + b_out_ref[...]                                   # (TM, FOUT)

    # Single tanh pass; sigmoid(y) = 0.5*tanh(y/2) + 0.5 with the 0.5 (and n*a)
    # column scales already folded into w_out / b_out on the host.
    t = jnp.tanh(z)
    lane = jax.lax.broadcasted_iota(jnp.int32, t.shape, 1)
    sig = 0.5 * t + 0.5
    o_ref[...] = jnp.where((lane == 0) | (lane == 2), sig,
                           jnp.where(lane == 1, t, jnp.zeros_like(t)))


def _tile_and_pad(n):
    """Pick a big batch tile, but keep >=2 grid steps when possible (v7x has 2 TCs)."""
    tm = TM_MAX
    while tm > TM_MIN and pl.cdiv(n, tm) < 2:
        tm //= 2
    n_pad = pl.cdiv(n, tm) * tm
    return tm, n_pad


def ga_pinn_forward(x, params):
    """x: [N, 2] f32 -> [N, 3] f32 (rho, u, p)."""
    (w_in, b_in, w_hid, b_hid, w_out, b_out, a_hid, a_out) = params
    N = x.shape[0]
    tm, n_pad = _tile_and_pad(N)

    # ---- fold trainable slopes into weights/biases (exact rewrite, tiny host cost) ----
    s_in = N_HIDDEN * a_hid[0]
    w_in_f = w_in * s_in
    b_in_f = b_in * s_in
    s_hid = (N_HIDDEN * a_hid[1:])[:, None, None]            # (NUM_HIDDEN,1,1)
    w_hid_f = w_hid * s_hid
    b_hid_f = b_hid * s_hid
    # output columns: sigmoid lanes get the extra 0.5 half-angle factor
    col_scale = jnp.zeros((FOUT,), jnp.float32)
    col_scale = col_scale.at[0].set(0.5 * N_RHO * a_out[0])
    col_scale = col_scale.at[1].set(N_U * a_out[1])
    col_scale = col_scale.at[2].set(0.5 * N_P * a_out[2])
    w_out_f = w_out * col_scale[None, :]
    b_out_f = b_out * col_scale[None, :]

    # ---- batch padding only (no feature padding of the streamed input) ----
    x_p = jnp.zeros((n_pad, 2), jnp.float32).at[:N, :].set(x)

    grid = (n_pad // tm,)
    out = pl.pallas_call(
        ga_pinn_mlp_kernel,
        out_shape=jax.ShapeDtypeStruct((n_pad, FOUT), jnp.float32),
        grid=grid,
        in_specs=[
            pl.BlockSpec((tm, 2), lambda i: (i, 0)),                      # x
            pl.BlockSpec((2, FPAD), lambda i: (0, 0)),                    # w_in
            pl.BlockSpec((1, FPAD), lambda i: (0, 0)),                    # b_in
            pl.BlockSpec((NUM_HIDDEN, FPAD, FPAD), lambda i: (0, 0, 0)),  # w_hid
            pl.BlockSpec((NUM_HIDDEN, 1, FPAD), lambda i: (0, 0, 0)),     # b_hid
            pl.BlockSpec((FPAD, FOUT), lambda i: (0, 0)),                 # w_out
            pl.BlockSpec((1, FOUT), lambda i: (0, 0)),                    # b_out
        ],
        out_specs=pl.BlockSpec((tm, FOUT), lambda i: (i, 0)),
        compiler_params=pltpu.CompilerParams(
            dimension_semantics=("parallel",)),
    )(x_p, w_in_f, b_in_f, w_hid_f, b_hid_f, w_out_f, b_out_f)

    return out[:N, :3]


# ---------------- deterministic parameter init (mirrors nn.Linear shapes) ----------------
def _xavier_uniform(key, fan_in, fan_out):
    bound = float(np.sqrt(6.0 / (fan_in + fan_out)))
    # nn.Linear weight is (out, in); we store it transposed (in, out) for x @ W.
    return jax.random.uniform(key, (fan_in, fan_out), jnp.float32, -bound, bound)


def _bias(key, fan_in, fan_out):
    bound = float(1.0 / np.sqrt(fan_in))
    return jax.random.uniform(key, (fan_out,), jnp.float32, -bound, bound)


def init_params(seed=0):
    key = jax.random.PRNGKey(seed)
    keys = jax.random.split(key, 2 * (NUM_HIDDEN + 2))
    k = iter(keys)

    # input layer: Linear(2, H)
    w_in = jnp.zeros((2, FPAD), jnp.float32).at[:, :H].set(_xavier_uniform(next(k), 2, H))
    b_in = jnp.zeros((1, FPAD), jnp.float32).at[0, :H].set(_bias(next(k), 2, H))

    # hidden layers: Linear(H, H) * NUM_HIDDEN (zero-padded to FPAD lanes)
    w_hid = jnp.zeros((NUM_HIDDEN, FPAD, FPAD), jnp.float32)
    b_hid = jnp.zeros((NUM_HIDDEN, 1, FPAD), jnp.float32)
    for i in range(NUM_HIDDEN):
        w_hid = w_hid.at[i, :H, :H].set(_xavier_uniform(next(k), H, H))
        b_hid = b_hid.at[i, 0, :H].set(_bias(next(k), H, H))

    # final layer: Linear(H, 3) into a narrow FOUT-lane slab
    w_out = jnp.zeros((FPAD, FOUT), jnp.float32).at[:H, :3].set(_xavier_uniform(next(k), H, 3))
    b_out = jnp.zeros((1, FOUT), jnp.float32).at[0, :3].set(_bias(next(k), H, 3))

    # trainable activation slopes
    a_hid = jnp.full((NUM_HIDDEN + 1,), SLOPE_HIDDEN, jnp.float32)
    a_out = jnp.array([SLOPE_RHO, SLOPE_U, SLOPE_P], jnp.float32)

    return (w_in, b_in, w_hid, b_hid, w_out, b_out, a_hid, a_out)


# ---------------- pure-JAX reference (for correctness check) ----------------
def ga_pinn_forward_ref(x, params):
    (w_in, b_in, w_hid, b_hid, w_out, b_out, a_hid, a_out) = params
    h = jnp.tanh(N_HIDDEN * a_hid[0] * (x @ w_in[:, :H] + b_in[0, :H]))
    for i in range(NUM_HIDDEN):
        h = jnp.tanh(N_HIDDEN * a_hid[i + 1] * (h @ w_hid[i, :H, :H] + b_hid[i, 0, :H]))
    z = h @ w_out[:H, :3] + b_out[0, :3]
    rho = jax.nn.sigmoid(N_RHO * a_out[0] * z[:, 0:1])
    u = jnp.tanh(N_U * a_out[1] * z[:, 1:2])
    p = jax.nn.sigmoid(N_P * a_out[2] * z[:, 2:3])
    return jnp.concatenate([rho, u, p], axis=1)


if __name__ == "__main__":
    params = init_params(seed=0)

    # Example input: N=200 collocation points (t, x) — not a multiple of the tile,
    # to exercise the batch-padding path and a multi-step grid.
    key = jax.random.PRNGKey(0)
    N = 200
    t = jax.random.uniform(key, (N, 1), jnp.float32, 0.0, 0.2)
    xx = jax.random.uniform(jax.random.fold_in(key, 1), (N, 1), jnp.float32, 0.0, 1.0)
    inp = jnp.concatenate([t, xx], axis=1)  # [N, 2]

    out = jax.block_until_ready(ga_pinn_forward(inp, params))
    ref = ga_pinn_forward_ref(inp, params)

    assert out.shape == (N, 3) and out.dtype == jnp.float32
    np.testing.assert_allclose(np.asarray(out), np.asarray(ref), rtol=1e-5, atol=1e-5)

    print("KERNEL_OK")
</pallas_src>

<mosaic_0001>
module attributes {stable_mosaic.version = 11 : i64} {
  func.func @ga_pinn_mlp_kernel(%arg0: i32, %arg1: memref<128x2xf32, #tpu.memory_space<vmem>>, %arg2: memref<2x128xf32, #tpu.memory_space<vmem>>, %arg3: memref<1x128xf32, #tpu.memory_space<vmem>>, %arg4: memref<3x128x128xf32, #tpu.memory_space<vmem>>, %arg5: memref<3x1x128xf32, #tpu.memory_space<vmem>>, %arg6: memref<128x8xf32, #tpu.memory_space<vmem>>, %arg7: memref<1x8xf32, #tpu.memory_space<vmem>>, %arg8: memref<128x8xf32, #tpu.memory_space<vmem>>) attributes {dimension_semantics = [#tpu.dimension_semantics<parallel>], iteration_bounds = array<i64: 2>, scalar_prefetch = 0 : i64, scratch_operands = 0 : i64, tpu.core_type = #tpu.core_type<tc>, window_params = [{transform_indices = @transform_0, window_bounds = array<i64: 128, 2>}, {pipeline_mode = #tpu.pipeline_mode<synchronous>, transform_indices = @transform_1, window_bounds = array<i64: 2, 128>}, {pipeline_mode = #tpu.pipeline_mode<synchronous>, transform_indices = @transform_2, window_bounds = array<i64: 1, 128>}, {pipeline_mode = #tpu.pipeline_mode<synchronous>, transform_indices = @transform_3, window_bounds = array<i64: 3, 128, 128>}, {pipeline_mode = #tpu.pipeline_mode<synchronous>, transform_indices = @transform_4, window_bounds = array<i64: 3, 1, 128>}, {pipeline_mode = #tpu.pipeline_mode<synchronous>, transform_indices = @transform_5, window_bounds = array<i64: 128, 8>}, {pipeline_mode = #tpu.pipeline_mode<synchronous>, transform_indices = @transform_6, window_bounds = array<i64: 1, 8>}, {transform_indices = @transform_7, window_bounds = array<i64: 128, 8>}]} {
    %c0 = arith.constant 0 : index
    %c0_0 = arith.constant 0 : index
    %0 = vector.load %arg1[%c0, %c0_0] : memref<128x2xf32, #tpu.memory_space<vmem>>, vector<128x2xf32>
    %1 = vector.extract_strided_slice %0 {offsets = [0, 0], sizes = [128, 1], strides = [1, 1]} : vector<128x2xf32> to vector<128x1xf32>
    %c0_1 = arith.constant 0 : index
    %c0_2 = arith.constant 0 : index
    %2 = vector.load %arg2[%c0_1, %c0_2] : memref<2x128xf32, #tpu.memory_space<vmem>>, vector<1x128xf32>
    %3 = vector.broadcast %1 : vector<128x1xf32> to vector<128x128xf32>
    %4 = vector.broadcast %2 : vector<1x128xf32> to vector<128x128xf32>
    %5 = arith.mulf %3, %4 : vector<128x128xf32>
    %6 = vector.extract_strided_slice %0 {offsets = [0, 1], sizes = [128, 1], strides = [1, 1]} : vector<128x2xf32> to vector<128x1xf32>
    %c1 = arith.constant 1 : index
    %c0_3 = arith.constant 0 : index
    %7 = vector.load %arg2[%c1, %c0_3] : memref<2x128xf32, #tpu.memory_space<vmem>>, vector<1x128xf32>
    %8 = vector.broadcast %6 : vector<128x1xf32> to vector<128x128xf32>
    %9 = vector.broadcast %7 : vector<1x128xf32> to vector<128x128xf32>
    %10 = arith.mulf %8, %9 : vector<128x128xf32>
    %11 = arith.addf %5, %10 : vector<128x128xf32>
    %c0_4 = arith.constant 0 : index
    %c0_5 = arith.constant 0 : index
    %12 = vector.load %arg3[%c0_4, %c0_5] : memref<1x128xf32, #tpu.memory_space<vmem>>, vector<1x128xf32>
    %13 = vector.broadcast %12 : vector<1x128xf32> to vector<128x128xf32>
    %14 = arith.addf %11, %13 : vector<128x128xf32>
    %15 = math.tanh %14 : vector<128x128xf32>
    %c0_6 = arith.constant 0 : index
    %c0_7 = arith.constant 0 : index
    %c0_8 = arith.constant 0 : index
    %16 = vector.load %arg4[%c0_6, %c0_7, %c0_8] : memref<3x128x128xf32, #tpu.memory_space<vmem>>, vector<1x128x128xf32>
    %17 = vector.shape_cast %16 : vector<1x128x128xf32> to vector<128x128xf32>
    %cst = arith.constant dense<0.000000e+00> : vector<128x128xf32>
    %18 = tpu.matmul %15, %17, %cst {dimension_numbers = #tpu.dot_dimension_numbers<[1], [0], [0], [1], [0, 0, 1, 1], [], []>} : vector<128x128xf32>, vector<128x128xf32>, vector<128x128xf32> -> vector<128x128xf32>
    %c0_9 = arith.constant 0 : index
    %c0_10 = arith.constant 0 : index
    %c0_11 = arith.constant 0 : index
    %19 = vector.load %arg5[%c0_9, %c0_10, %c0_11] : memref<3x1x128xf32, #tpu.memory_space<vmem>>, vector<1x1x128xf32>
    %20 = vector.shape_cast %19 : vector<1x1x128xf32> to vector<1x128xf32>
    %21 = vector.broadcast %20 : vector<1x128xf32> to vector<128x128xf32>
    %22 = arith.addf %18, %21 : vector<128x128xf32>
    %23 = math.tanh %22 : vector<128x128xf32>
    %c1_12 = arith.constant 1 : index
    %c0_13 = arith.constant 0 : index
    %c0_14 = arith.constant 0 : index
    %24 = vector.load %arg4[%c1_12, %c0_13, %c0_14] : memref<3x128x128xf32, #tpu.memory_space<vmem>>, vector<1x128x128xf32>
    %25 = vector.shape_cast %24 : vector<1x128x128xf32> to vector<128x128xf32>
    %cst_15 = arith.constant dense<0.000000e+00> : vector<128x128xf32>
    %26 = tpu.matmul %23, %25, %cst_15 {dimension_numbers = #tpu.dot_dimension_numbers<[1], [0], [0], [1], [0, 0, 1, 1], [], []>} : vector<128x128xf32>, vector<128x128xf32>, vector<128x128xf32> -> vector<128x128xf32>
    %c1_16 = arith.constant 1 : index
    %c0_17 = arith.constant 0 : index
    %c0_18 = arith.constant 0 : index
    %27 = vector.load %arg5[%c1_16, %c0_17, %c0_18] : memref<3x1x128xf32, #tpu.memory_space<vmem>>, vector<1x1x128xf32>
    %28 = vector.shape_cast %27 : vector<1x1x128xf32> to vector<1x128xf32>
    %29 = vector.broadcast %28 : vector<1x128xf32> to vector<128x128xf32>
    %30 = arith.addf %26, %29 : vector<128x128xf32>
    %31 = math.tanh %30 : vector<128x128xf32>
    %c2 = arith.constant 2 : index
    %c0_19 = arith.constant 0 : index
    %c0_20 = arith.constant 0 : index
    %32 = vector.load %arg4[%c2, %c0_19, %c0_20] : memref<3x128x128xf32, #tpu.memory_space<vmem>>, vector<1x128x128xf32>
    %33 = vector.shape_cast %32 : vector<1x128x128xf32> to vector<128x128xf32>
    %cst_21 = arith.constant dense<0.000000e+00> : vector<128x128xf32>
    %34 = tpu.matmul %31, %33, %cst_21 {dimension_numbers = #tpu.dot_dimension_numbers<[1], [0], [0], [1], [0, 0, 1, 1], [], []>} : vector<128x128xf32>, vector<128x128xf32>, vector<128x128xf32> -> vector<128x128xf32>
    %c2_22 = arith.constant 2 : index
    %c0_23 = arith.constant 0 : index
    %c0_24 = arith.constant 0 : index
    %35 = vector.load %arg5[%c2_22, %c0_23, %c0_24] : memref<3x1x128xf32, #tpu.memory_space<vmem>>, vector<1x1x128xf32>
    %36 = vector.shape_cast %35 : vector<1x1x128xf32> to vector<1x128xf32>
    %37 = vector.broadcast %36 : vector<1x128xf32> to vector<128x128xf32>
    %38 = arith.addf %34, %37 : vector<128x128xf32>
    %39 = math.tanh %38 : vector<128x128xf32>
    %c0_25 = arith.constant 0 : index
    %c0_26 = arith.constant 0 : index
    %40 = vector.load %arg6[%c0_25, %c0_26] : memref<128x8xf32, #tpu.memory_space<vmem>>, vector<128x8xf32>
    %cst_27 = arith.constant dense<0.000000e+00> : vector<128x8xf32>
    %41 = tpu.matmul %39, %40, %cst_27 {dimension_numbers = #tpu.dot_dimension_numbers<[1], [0], [0], [1], [0, 0, 1, 1], [], []>} : vector<128x128xf32>, vector<128x8xf32>, vector<128x8xf32> -> vector<128x8xf32>
    %c0_28 = arith.constant 0 : index
    %c0_29 = arith.constant 0 : index
    %42 = vector.load %arg7[%c0_28, %c0_29] : memref<1x8xf32, #tpu.memory_space<vmem>>, vector<1x8xf32>
    %43 = vector.broadcast %42 : vector<1x8xf32> to vector<128x8xf32>
    %44 = arith.addf %41, %43 : vector<128x8xf32>
    %45 = math.tanh %44 : vector<128x8xf32>
    %46 = tpu.iota {dimensions = array<i32: 1>} : vector<128x8xi32>
    %cst_30 = arith.constant 5.000000e-01 : f32
    %47 = vector.broadcast %cst_30 : f32 to vector<128x8xf32>
    %48 = arith.mulf %47, %45 : vector<128x8xf32>
    %cst_31 = arith.constant 5.000000e-01 : f32
    %49 = vector.broadcast %cst_31 : f32 to vector<128x8xf32>
    %50 = arith.addf %48, %49 : vector<128x8xf32>
    %c0_i32 = arith.constant 0 : i32
    %51 = vector.broadcast %c0_i32 : i32 to vector<128x8xi32>
    %52 = arith.cmpi eq, %46, %51 : vector<128x8xi32>
    %c2_i32 = arith.constant 2 : i32
    %53 = vector.broadcast %c2_i32 : i32 to vector<128x8xi32>
    %54 = arith.cmpi eq, %46, %53 : vector<128x8xi32>
    %55 = arith.ori %52, %54 : vector<128x8xi1>
    %c1_i32 = arith.constant 1 : i32
    %56 = vector.broadcast %c1_i32 : i32 to vector<128x8xi32>
    %57 = arith.cmpi eq, %46, %56 : vector<128x8xi32>
    %cst_32 = arith.constant 0.000000e+00 : f32
    %58 = vector.broadcast %cst_32 : f32 to vector<128x8xf32>
    %59 = arith.select %57, %45, %58 : vector<128x8xi1>, vector<128x8xf32>
    %60 = arith.select %55, %50, %59 : vector<128x8xi1>, vector<128x8xf32>
    %c0_33 = arith.constant 0 : index
    %c0_34 = arith.constant 0 : index
    %61 = vector.load %arg8[%c0_33, %c0_34] : memref<128x8xf32, #tpu.memory_space<vmem>>, vector<128x8xf32>
    tpu.vector_store %arg8[%c0_33, %c0_34], %60 {strides = array<i32>} : memref<128x8xf32, #tpu.memory_space<vmem>>, vector<128x8xf32>,
    return
  }
  func.func @transform_0(%arg0: i32) -> (i32, i32) {
    %c0_i32 = arith.constant 0 : i32
    %c0_i32_0 = arith.constant 0 : i32
    return %arg0, %c0_i32 : i32, i32
  }
  func.func @transform_1(%arg0: i32) -> (i32, i32) {
    %c0_i32 = arith.constant 0 : i32
    %c0_i32_0 = arith.constant 0 : i32
    %c0_i32_1 = arith.constant 0 : i32
    return %c0_i32, %c0_i32_0 : i32, i32
  }
  func.func @transform_2(%arg0: i32) -> (i32, i32) {
    %c0_i32 = arith.constant 0 : i32
    %c0_i32_0 = arith.constant 0 : i32
    %c0_i32_1 = arith.constant 0 : i32
    return %c0_i32, %c0_i32_0 : i32, i32
  }
  func.func @transform_3(%arg0: i32) -> (i32, i32, i32) {
    %c0_i32 = arith.constant 0 : i32
    %c0_i32_0 = arith.constant 0 : i32
    %c0_i32_1 = arith.constant 0 : i32
    %c0_i32_2 = arith.constant 0 : i32
    return %c0_i32, %c0_i32_0, %c0_i32_1 : i32, i32, i32
  }
  func.func @transform_4(%arg0: i32) -> (i32, i32, i32) {
    %c0_i32 = arith.constant 0 : i32
    %c0_i32_0 = arith.constant 0 : i32
    %c0_i32_1 = arith.constant 0 : i32
    %c0_i32_2 = arith.constant 0 : i32
    return %c0_i32, %c0_i32_0, %c0_i32_1 : i32, i32, i32
  }
  func.func @transform_5(%arg0: i32) -> (i32, i32) {
    %c0_i32 = arith.constant 0 : i32
    %c0_i32_0 = arith.constant 0 : i32
    %c0_i32_1 = arith.constant 0 : i32
    return %c0_i32, %c0_i32_0 : i32, i32
  }
  func.func @transform_6(%arg0: i32) -> (i32, i32) {
    %c0_i32 = arith.constant 0 : i32
    %c0_i32_0 = arith.constant 0 : i32
    %c0_i32_1 = arith.constant 0 : i32
    return %c0_i32, %c0_i32_0 : i32, i32
  }
  func.func @transform_7(%arg0: i32) -> (i32, i32) {
    %c0_i32 = arith.constant 0 : i32
    %c0_i32_0 = arith.constant 0 : i32
    return %arg0, %c0_i32 : i32, i32
  }
}

</mosaic_0001>

<bundles_post_ra>
// kernel: tpu_custom_call.1
= control target key start
LH: loop header
LB: loop body
LE: loop exit
PB: predicated region body
PF: predicated region fallthrough
CT: control target
= control target key end

     0   :  { %s1376_s24 = smov 0   ;;  %s1887_s0 = inlined_call_operand.vmem [shape: f32[256,2], index: 0, kind: input, shape index: {}]   ;;  %s1888_s1 = inlined_call_operand.vmem [shape: f32[2,128], index: 1, kind: input, shape index: {}]   ;;  %s1889_s2 = inlined_call_operand.vmem [shape: f32[1,128], index: 2, kind: input, shape index: {}]   ;;  %s1890_s3 = inlined_call_operand.vmem [shape: f32[3,128,128], index: 3, kind: input, shape index: {}]   ;;  %s1891_s4 = inlined_call_operand.vmem [shape: f32[3,1,128], index: 4, kind: input, shape index: {}]   ;;  %s1892_s5 = inlined_call_operand.vmem [shape: f32[128,8], index: 5, kind: input, shape index: {}]   ;;  %s1893_s6 = inlined_call_operand.vmem [shape: f32[1,8], index: 6, kind: input, shape index: {}]   ;;  %s1894_s7 = inlined_call_operand.vmem [shape: f32[256,8], index: 7, kind: output, shape index: {}]  }
   0x1 LB: > { %s1081_s25 = sadd.s32 4294967295, %s1332_s24   ;;  %p1085_p0 = scmp.ge.s32.totalorder %s1332_s24, 1  ;;  %s1332_s24 = sphi %s1376_s24, %s17_s24  }
   0x2   : > { %p238_p1 = scmp.lt.s32.totalorder %s1332_s24, 3 }
   0x4   : > { %p239_p2 = pnand %p1085_p0, %p238_p1 }
   0x5   : > { %s1086_s26 = sshll.u32 (!%p239_p2), %s1081_s25, 4 }
   0x6   : > { %242 = sbr.rel (%p239_p2) target bundleno = 830 (0x33e), region = 48  ;;  %p271_p3 = scmp.lt.s32.totalorder (!%p239_p2), %s1086_s26, 31 }
   0xb   : > { %v1334_v0 = vmov 0   ;;  %s1898_s26 = smov (!%p271_p3, %s1086_s26), 31  ;;  %v1335_v4 = vmov 1   ;;  %v545_v13 = vld [vmem:[%s1890_s3 + $0x78] sm:$0xff]  ;;  %v544_v14 = vld [vmem:[%s1890_s3 + $0x70] sm:$0xff]  ;;  %v543_v15 = vld [vmem:[%s1890_s3 + $0x68] sm:$0xff] }
   0xc   : > { %1138 = vset.pattern.permute.xlu1 %v1334_v0  ;;  %1136 = vset.pattern.permute.xlu0 %v1334_v0  ;;  %s1087_s27 = sshll.u32 %s1898_s26, 3  ;;  %v542_v16 = vld [vmem:[%s1890_s3 + $0x60] sm:$0xff]  ;;  %v541_v19 = vld [vmem:[%s1890_s3 + $0x58] sm:$0xff]  ;;  %v540_v22 = vld [vmem:[%s1890_s3 + $0x50] sm:$0xff]  ;;  %vm1008_vm4 = vcmask 64512  }
   0xd   : > { %1140 = vset.pattern.permute.xlu2 %v1334_v0  ;;  %s1395_s30 = scalar_lea.vmem %s1887_s0, %s1087_s27  ;;  %550 = vmatpush.msra.mxu0 %v545_v13  ;;  %v539_v23 = vld [vmem:[%s1890_s3 + $0x48] sm:$0xff]  ;;  %v538_v24 = vld [vmem:[%s1890_s3 + $0x40] sm:$0xff]  ;;  %v537_v25 = vld [vmem:[%s1890_s3 + $0x38] sm:$0xff]  ;;  %s1772_s13 = scalar_lea.vmem %s1894_s7, %s1087_s27 }
   0xe   : > { %v283_v1 = vld [vmem:[%s1395_s30 + $0x8] sm:$0xff]  ;;  %v282_v2 = vld [vmem:[%s1395_s30] sm:$0xff]  ;;  %v284_v3 = vld [vmem:[%s1395_s30 + $0x10] sm:$0xff] }
   0xf   : > { %306 = vperm.xlu1 %1138, %v283_v1   ;;  %301 = vperm.xlu0 %1136, %v282_v2   ;;  %v285_v5 = vld [vmem:[%s1395_s30 + $0x18] sm:$0xff]  ;;  %v286_v6 = vld [vmem:[%s1395_s30 + $0x20] sm:$0xff]  ;;  %v288_v7 = vld [vmem:[%s1395_s30 + $0x30] sm:$0xff] }
  0x10   : > { %311 = vperm.xlu2 %1140, %v284_v3   ;;  %v287_v8 = vld [vmem:[%s1395_s30 + $0x28] sm:$0xff]  ;;  %v289_v10 = vld [vmem:[%s1395_s30 + $0x38] sm:$0xff]  ;;  %v290_v12 = vld [vmem:[%s1395_s30 + $0x40] sm:$0xff]  ;;  %551 = vmatpush.msra.mxu0 %v544_v14 }
  0x11   : > { %v291_v9 = vld [vmem:[%s1395_s30 + $0x48] sm:$0xff]  ;;  %v293_v11 = vld [vmem:[%s1395_s30 + $0x58] sm:$0xff]  ;;  %v292_v17 = vld [vmem:[%s1395_s30 + $0x50] sm:$0xff] }
  0x12   : > { %552 = vmatpush.msra.mxu0 %v543_v15  ;;  %v296_v18 = vld [vmem:[%s1395_s30 + $0x70] sm:$0xff]  ;;  %v294_v20 = vld [vmem:[%s1395_s30 + $0x60] sm:$0xff]  ;;  %v295_v21 = vld [vmem:[%s1395_s30 + $0x68] sm:$0xff] }
  0x13   : > { %v536_v26 = vld [vmem:[%s1890_s3 + $0x30] sm:$0xff]  ;;  %v535_v27 = vld [vmem:[%s1890_s3 + $0x28] sm:$0xff]  ;;  %v297_v28 = vld [vmem:[%s1395_s30 + $0x78] sm:$0xff] }
  0x14   : > { %553 = vmatpush.msra.mxu0 %v542_v16  ;;  %v534_v29 = vld [vmem:[%s1890_s3 + $0x20] sm:$0xff]  ;;  %v533_v30 = vld [vmem:[%s1890_s3 + $0x18] sm:$0xff]  ;;  %v532_v31 = vld [vmem:[%s1890_s3 + $0x10] sm:$0xff] }
  0x15   : > { %v531_v32 = vld [vmem:[%s1890_s3 + $0x8] sm:$0xff]  ;;  %v530_v33 = vld [vmem:[%s1890_s3] sm:$0xff] }
  0x16   : > { %554 = vmatpush.msra.mxu0 %v541_v19  ;;  %v1484_v36 = vld [vmem:[%s1888_s1] ss:$0 sm:$0xff]  ;;  %v1489_v38 = vld [vmem:[%s1888_s1 + $0x1] ss:$0 sm:$0xff] }
  0x17   : > { %1139 = vset.pattern.permute.xlu1 %v1335_v4  ;;  %1137 = vset.pattern.permute.xlu0 %v1335_v4  ;;  %v1495_v41 = vld [vmem:[%s1889_s2] ss:$0 sm:$0xff] }
  0x18   : > { %402 = vperm.xlu1 %1139, %v283_v1   ;;  %398 = vperm.xlu0 %1137, %v282_v2  }
  0x19   : > { %1141 = vset.pattern.permute.xlu2 %v1335_v4  ;;  %555 = vmatpush.msra.mxu0 %v540_v22 }
  0x1a   : > { %406 = vperm.xlu2 %1141, %v284_v3  }
  0x1b   : > { %556 = vmatpush.msra.mxu0 %v539_v23 }
  0x1d   : > { %557 = vmatpush.msra.mxu0 %v538_v24 }
  0x1f   : > { %558 = vmatpush.msra.mxu0 %v537_v25 }
  0x20   : > { %1142 = vset.pattern.permute.xlu1 %v1334_v0  ;;  %1143 = vset.pattern.permute.xlu0 %v1334_v0 }
  0x21   : > { %316 = vperm.xlu1 %1142, %v285_v5   ;;  %321 = vperm.xlu0 %1143, %v286_v6  }
  0x22   : > { %410 = vperm.xlu2 %1141, %v285_v5   ;;  %559 = vmatpush.msra.mxu0 %v536_v26 }
  0x24   : > { %560 = vmatpush.msra.mxu0 %v535_v27 }
  0x26   : > { %561 = vmatpush.msra.mxu0 %v534_v29 }
  0x28   : > { %562 = vmatpush.msra.mxu0 %v533_v30 }
  0x29   : > { %1144 = vset.pattern.permute.xlu1 %v1335_v4  ;;  %1146 = vset.pattern.permute.xlu0 %v1335_v4 }
  0x2a   : > { %414 = vperm.xlu1 %1144, %v286_v6   ;;  %422 = vperm.xlu0 %1146, %v288_v7  }
  0x2b   : > { %1145 = vset.pattern.permute.xlu2 %v1334_v0  ;;  %563 = vmatpush.msra.mxu0 %v532_v31 }
  0x2c   : > { %326 = vperm.xlu2 %1145, %v287_v8  }
  0x2d   : > { %564 = vmatpush.msra.mxu0 %v531_v32 }
  0x2f   : > { %565 = vmatpush.msra.mxu0 %v530_v33 }
  0x32   : > { %418 = vperm.xlu1 %1144, %v287_v8   ;;  %1149 = vset.pattern.permute.xlu0 %v1334_v0 }
  0x33   : > { %346 = vperm.xlu0 %1149, %v291_v9  }
  0x34   : > { %331 = vperm.xlu2 %1145, %v288_v7  }
  0x3a   : > { %1147 = vset.pattern.permute.xlu1 %v1334_v0 }
  0x3b   : > { %336 = vperm.xlu1 %1147, %v289_v10   ;;  %1152 = vset.pattern.permute.xlu0 %v1335_v4 }
  0x3c   : > { %1148 = vset.pattern.permute.xlu2 %v1335_v4  ;;  %442 = vperm.xlu0 %1152, %v293_v11  }
  0x3d   : > { %426 = vperm.xlu2 %1148, %v289_v10  }
  0x43   : > { %341 = vperm.xlu1 %1147, %v290_v12  }
  0x44   : > { %1155 = vset.pattern.permute.xlu0 %v1334_v0 }
  0x45   : > { %430 = vperm.xlu2 %1148, %v290_v12   ;;  %371 = vperm.xlu0 %1155, %v296_v18  }
  0x4b   : > { %1150 = vset.pattern.permute.xlu1 %v1335_v4 }
  0x4c   : > { %434 = vperm.xlu1 %1150, %v291_v9  }
  0x4d   : > { %1151 = vset.pattern.permute.xlu2 %v1334_v0  ;;  %1158 = vset.pattern.permute.xlu0 %v1335_v4 }
  0x4e   : > { %351 = vperm.xlu2 %1151, %v292_v17  }
  0x54   : > { %438 = vperm.xlu1 %1150, %v292_v17  }
  0x56   : > { %356 = vperm.xlu2 %1151, %v293_v11  }
  0x5c   : > { %1153 = vset.pattern.permute.xlu1 %v1334_v0 }
  0x5d   : > { %361 = vperm.xlu1 %1153, %v294_v20  }
  0x5e   : > { %1154 = vset.pattern.permute.xlu2 %v1335_v4 }
  0x5f   : > { %446 = vperm.xlu2 %1154, %v294_v20  }
  0x65   : > { %366 = vperm.xlu1 %1153, %v295_v21  }
  0x67   : > { %450 = vperm.xlu2 %1154, %v295_v21  }
  0x6a   : > { %v312_v37 = vpop.permute.xlu2 %311 }
  0x6b   : > { %v382_v50 = vmul.f32 %v1484_v36, %v312_v37 }
  0x6d   : > { %1156 = vset.pattern.permute.xlu1 %v1335_v4 }
  0x6e   : > { %454 = vperm.xlu1 %1156, %v296_v18  }
  0x6f   : > { %1157 = vset.pattern.permute.xlu2 %v1334_v0 }
  0x70   : > { %376 = vperm.xlu2 %1157, %v297_v28  }
  0x74   : > { %v407_v48 = vpop.permute.xlu2 %406 }
  0x75   : > { %v464_v52 = vmul.f32 %v1489_v38, %v407_v48 }
  0x76   : > { %458 = vperm.xlu1 %1156, %v297_v28  }
  0x77   : > { %v480_v55 = vadd.f32 %v464_v52, %v382_v50 }
  0x79   : > { %v500_v57 = vadd.f32 %v1495_v41, %v480_v55 }
  0x7c   : > { %v411_v56 = vpop.permute.xlu2 %410 }
  0x7d   : > { %v465_v58 = vmul.f32 %v1489_v38, %v411_v56 }
  0x81   : > { %v302_v34 = vpop.permute.xlu0 %301  ;;  %v307_v35 = vpop.permute.xlu1 %306 }
  0x82   : > { %v380_v40 = vmul.f32 %v1484_v36, %v302_v34  ;;  %v381_v45 = vmul.f32 %v1484_v36, %v307_v35 }
  0x86   : > { %v327_v2 = vpop.permute.xlu2 %326 }
  0x87   : > { %v385_v8 = vmul.f32 %v1484_v36, %v327_v2 }
  0x8a   : > { %v399_v39 = vpop.permute.xlu0 %398  ;;  %v403_v42 = vpop.permute.xlu1 %402 }
  0x8b   : > { %v462_v43 = vmul.f32 %v1489_v38, %v399_v39  ;;  %v463_v46 = vmul.f32 %v1489_v38, %v403_v42 }
  0x8d   : > { %v478_v44 = vadd.f32 %v462_v43, %v380_v40  ;;  %v479_v49 = vadd.f32 %v463_v46, %v381_v45 }
  0x8e   : > { %v332_v10 = vpop.permute.xlu2 %331 }
  0x8f   : > { %v498_v47 = vadd.f32 %v1495_v41, %v478_v44  ;;  %v499_v51 = vadd.f32 %v1495_v41, %v479_v49  ;;  %v386_v17 = vmul.f32 %v1484_v36, %v332_v10  ;;  %v1098_v10 = vld [vmem:[%s1890_s3 + $0xc0] sm:$0xff] }
  0x91   : > { %1166 = vtanh.f32 %v498_v47 }
  0x92   : > { %1168 = vtanh.f32 %v499_v51 }
  0x93   : > { %v317_v53 = vpop.permute.xlu1 %316  ;;  %v322_v62 = vpop.permute.xlu0 %321  ;;  %1170 = vtanh.f32 %v500_v57  ;;  %v1105_v57 = vld [vmem:[%s1890_s3 + $0xf8] sm:$0xff] }
  0x94   : > { %v383_v59 = vmul.f32 %v1484_v36, %v317_v53  ;;  %v384_v1 = vmul.f32 %v1484_v36, %v322_v62  ;;  %653 = vmatpush.msra.mxu1 %v1105_v57 }
  0x96   : > { %v481_v63 = vadd.f32 %v465_v58, %v383_v59  ;;  %v1104_v59 = vld [vmem:[%s1890_s3 + $0xf0] sm:$0xff] }
  0x97   : > { %v1167_v54 = vpop.eup %1166  ;;  %v427_v19 = vpop.permute.xlu2 %426  ;;  %654 = vmatpush.msra.mxu1 %v1104_v59 }
  0x98   : > { %566 = vmatmul.f32.vlgmr.msra.gmra.mxu0 %v1167_v54  ;;  %v1169_v60 = vpop.eup %1168  ;;  %v501_v3 = vadd.f32 %v1495_v41, %v481_v63  ;;  %v469_v21 = vmul.f32 %v1489_v38, %v427_v19  ;;  %v1095_v19 = vld [vmem:[%s1890_s3 + $0xa8] sm:$0xff] }
  0x99   : > { %v1171_v4 = vpop.eup %1170 }
  0x9a   : > { %1172 = vtanh.f32 %v501_v3 }
  0x9c   : > { %v415_v61 = vpop.permute.xlu1 %414  ;;  %v423_v13 = vpop.permute.xlu0 %422 }
  0x9d   : > { %v466_v0 = vmul.f32 %v1489_v38, %v415_v61  ;;  %v468_v18 = vmul.f32 %v1489_v38, %v423_v13  ;;  %v1103_v61 = vld [vmem:[%s1890_s3 + $0xe8] sm:$0xff] }
  0x9e   : > { %655 = vmatpush.msra.mxu1 %v1103_v61 }
  0x9f   : > { %v482_v5 = vadd.f32 %v466_v0, %v384_v1  ;;  %v484_v20 = vadd.f32 %v468_v18, %v386_v17  ;;  %v431_v27 = vpop.permute.xlu2 %430  ;;  %v1102_v0 = vld [vmem:[%s1890_s3 + $0xe0] sm:$0xff]  ;;  %v1096_v17 = vld [vmem:[%s1890_s3 + $0xb0] sm:$0xff] }
  0xa0   : > { %569 = vmatmul.f32.gmra.mxu0 %v1169_v60  ;;  %v1173_v11 = vpop.eup %1172  ;;  %v470_v29 = vmul.f32 %v1489_v38, %v431_v27  ;;  %656 = vmatpush.msra.mxu1 %v1102_v0  ;;  %v1092_v27 = vld [vmem:[%s1890_s3 + $0x90] sm:$0xff] }
  0xa1   : > { %v502_v7 = vadd.f32 %v1495_v41, %v482_v5  ;;  %v504_v23 = vadd.f32 %v1495_v41, %v484_v20  ;;  %v1101_v5 = vld [vmem:[%s1890_s3 + $0xd8] sm:$0xff] }
  0xa2   : > { %657 = vmatpush.msra.mxu1 %v1101_v5 }
  0xa3   : > { %1174 = vtanh.f32 %v502_v7  ;;  %v1099_v7 = vld [vmem:[%s1890_s3 + $0xc8] sm:$0xff] }
  0xa4   : > { %v419_v6 = vpop.permute.xlu1 %418 }
  0xa5   : > { %v467_v9 = vmul.f32 %v1489_v38, %v419_v6  ;;  %v347_v33 = vpop.permute.xlu0 %346  ;;  %v1100_v6 = vld [vmem:[%s1890_s3 + $0xd0] sm:$0xff] }
  0xa6   : > { %v389_v37 = vmul.f32 %v1484_v36, %v347_v33  ;;  %658 = vmatpush.msra.mxu1 %v1100_v6 }
  0xa7   : > { %v483_v12 = vadd.f32 %v467_v9, %v385_v8 }
  0xa8   : > { %572 = vmatmul.f32.gmra.mxu0 %v1171_v4  ;;  %v352_v39 = vpop.permute.xlu2 %351  ;;  %659 = vmatpush.msra.mxu1 %v1099_v7 }
  0xa9   : > { %v1175_v15 = vpop.eup %1174  ;;  %v503_v16 = vadd.f32 %v1495_v41, %v483_v12  ;;  %v390_v46 = vmul.f32 %v1484_v36, %v352_v39 }
  0xaa   : > { %660 = vmatpush.msra.mxu1 %v1098_v10  ;;  %v1121_v10 = vld [vmem:[%s1890_s3 + $0x170] sm:$0xff] }
  0xab   : > { %1176 = vtanh.f32 %v503_v16 }
  0xac   : > { %1178 = vtanh.f32 %v504_v23 }
  0xad   : > { %v337_v14 = vpop.permute.xlu1 %336 }
  0xae   : > { %v387_v22 = vmul.f32 %v1484_v36, %v337_v14  ;;  %v443_v51 = vpop.permute.xlu0 %442  ;;  %v1097_v14 = vld [vmem:[%s1890_s3 + $0xb8] sm:$0xff] }
  0xaf   : > { %v473_v56 = vmul.f32 %v1489_v38, %v443_v51  ;;  %661 = vmatpush.msra.mxu1 %v1097_v14 }
  0xb0   : > { %575 = vmatmul.f32.gmra.mxu0 %v1173_v11  ;;  %v485_v26 = vadd.f32 %v469_v21, %v387_v22  ;;  %v357_v48 = vpop.permute.xlu2 %356 }
  0xb1   : > { %v1177_v25 = vpop.eup %1176  ;;  %v391_v55 = vmul.f32 %v1484_v36, %v357_v48  ;;  %662 = vmatpush.msra.mxu1 %v1096_v17  ;;  %v1117_v17 = vld [vmem:[%s1890_s3 + $0x150] sm:$0xff] }
  0xb2   : > { %v505_v28 = vadd.f32 %v1495_v41, %v485_v26  ;;  %v1179_v31 = vpop.eup %1178  ;;  %v1093_v26 = vld [vmem:[%s1890_s3 + $0x98] sm:$0xff] }
  0xb3   : > { %v489_v60 = vadd.f32 %v473_v56, %v391_v55  ;;  %663 = vmatpush.msra.mxu1 %v1095_v19  ;;  %v1115_v19 = vld [vmem:[%s1890_s3 + $0x140] sm:$0xff] }
  0xb4   : > { %1180 = vtanh.f32 %v505_v28  ;;  %v1091_v28 = vld [vmem:[%s1890_s3 + $0x88] sm:$0xff] }
  0xb5   : > { %v342_v24 = vpop.permute.xlu1 %341  ;;  %v509_v1 = vadd.f32 %v1495_v41, %v489_v60 }
  0xb6   : > { %v388_v30 = vmul.f32 %v1484_v36, %v342_v24  ;;  %v1094_v24 = vld [vmem:[%s1890_s3 + $0xa0] sm:$0xff] }
  0xb7   : > { %v372_v16 = vpop.permute.xlu0 %371  ;;  %664 = vmatpush.msra.mxu1 %v1094_v24  ;;  %v1113_v24 = vld [vmem:[%s1890_s3 + $0x130] sm:$0xff] }
  0xb8   : > { %578 = vmatmul.f32.gmra.mxu0 %v1175_v15  ;;  %v486_v34 = vadd.f32 %v470_v29, %v388_v30  ;;  %v394_v21 = vmul.f32 %v1484_v36, %v372_v16  ;;  %v1118_v16 = vld [vmem:[%s1890_s3 + $0x158] sm:$0xff] }
  0xb9   : > { %v447_v58 = vpop.permute.xlu2 %446  ;;  %665 = vmatpush.msra.mxu1 %v1093_v26  ;;  %v1111_v26 = vld [vmem:[%s1890_s3 + $0x120] sm:$0xff] }
  0xba   : > { %v1181_v40 = vpop.eup %1180  ;;  %v506_v42 = vadd.f32 %v1495_v41, %v486_v34  ;;  %v474_v62 = vmul.f32 %v1489_v38, %v447_v58  ;;  %v1090_v34 = vld [vmem:[%s1890_s3 + $0x80] sm:$0xff] }
  0xbb   : > { %666 = vmatpush.msra.mxu1 %v1092_v27 }
  0xbc   : > { %1182 = vtanh.f32 %v506_v42 }
  0xbd   : > { %667 = vmatpush.msra.mxu1 %v1091_v28 }
  0xbe   : > { %v435_v32 = vpop.permute.xlu1 %434 }
  0xbf   : > { %v471_v35 = vmul.f32 %v1489_v38, %v435_v32  ;;  %668 = vmatpush.msra.mxu1 %v1090_v34 }
  0xc0   : > { %581 = vmatmul.f32.gmra.mxu0 %v1177_v25 }
  0xc1   : > { %v487_v43 = vadd.f32 %v471_v35, %v389_v37  ;;  %v451_v8 = vpop.permute.xlu2 %450 }
  0xc2   : > { %v1183_v49 = vpop.eup %1182  ;;  %v475_v11 = vmul.f32 %v1489_v38, %v451_v8 }
  0xc3   : > { %v507_v45 = vadd.f32 %v1495_v41, %v487_v43 }
  0xc5   : > { %1184 = vtanh.f32 %v507_v45 }
  0xc6   : > { %v439_v44 = vpop.permute.xlu1 %438 }
  0xc7   : > { %v472_v47 = vmul.f32 %v1489_v38, %v439_v44 }
  0xc8   : > { %584 = vmatmul.f32.gmra.mxu0 %v1179_v31 }
  0xc9   : > { %v488_v50 = vadd.f32 %v472_v47, %v390_v46 }
  0xca   : > { %v377_v29 = vpop.permute.xlu2 %376 }
  0xcb   : > { %v1185_v53 = vpop.eup %1184  ;;  %v508_v54 = vadd.f32 %v1495_v41, %v488_v50  ;;  %v395_v32 = vmul.f32 %v1484_v36, %v377_v29 }
  0xcd   : > { %1186 = vtanh.f32 %v508_v54 }
  0xce   : > { %1188 = vtanh.f32 %v509_v1 }
  0xcf   : > { %v362_v52 = vpop.permute.xlu1 %361 }
  0xd0   : > { %587 = vmatmul.f32.gmra.mxu0 %v1181_v40  ;;  %v392_v63 = vmul.f32 %v1484_v36, %v362_v52 }
  0xd2   : > { %v490_v4 = vadd.f32 %v474_v62, %v392_v63 }
  0xd3   : > { %v1187_v3 = vpop.eup %1186 }
  0xd4   : > { %v510_v9 = vadd.f32 %v1495_v41, %v490_v4  ;;  %v1189_v13 = vpop.eup %1188 }
  0xd6   : > { %1190 = vtanh.f32 %v510_v9  ;;  %v1122_v9 = vld [vmem:[%s1890_s3 + $0x178] sm:$0xff] }
  0xd7   : > { %v367_v2 = vpop.permute.xlu1 %366  ;;  %756 = vmatpush.msra.mxu2 %v1122_v9 }
  0xd8   : > { %590 = vmatmul.f32.gmra.mxu0 %v1183_v49  ;;  %v393_v12 = vmul.f32 %v1484_v36, %v367_v2  ;;  %v1595_v36 = vld [vmem:[%s1891_s4] ss:$0 sm:$0xff] }
  0xd9   : > { %757 = vmatpush.msra.mxu2 %v1121_v10  ;;  %v852_v10 = vld [vmem:[%s1892_s5 + $0x78] sm:$0xff] }
  0xda   : > { %v491_v18 = vadd.f32 %v475_v11, %v393_v12  ;;  %v1120_v11 = vld [vmem:[%s1890_s3 + $0x168] sm:$0xff]  ;;  %v1119_v12 = vld [vmem:[%s1890_s3 + $0x160] sm:$0xff]  ;;  %857 = vmatpush.msra.mxu3 %v852_v10 }
  0xdb   : > { %758 = vmatpush.msra.mxu2 %v1120_v11 }
  0xdc   : > { %v1191_v22 = vpop.eup %1190  ;;  %v511_v23 = vadd.f32 %v1495_v41, %v491_v18  ;;  %v1116_v18 = vld [vmem:[%s1890_s3 + $0x148] sm:$0xff] }
  0xdd   : > { %759 = vmatpush.msra.mxu2 %v1119_v12 }
  0xde   : > { %1192 = vtanh.f32 %v511_v23  ;;  %v1114_v23 = vld [vmem:[%s1890_s3 + $0x138] sm:$0xff] }
  0xdf   : > { %760 = vmatpush.msra.mxu2 %v1118_v16  ;;  %v849_v16 = vld [vmem:[%s1892_s5 + $0x60] sm:$0xff] }
  0xe0   : > { %593 = vmatmul.f32.gmra.mxu0 %v1185_v53  ;;  %v455_v15 = vpop.permute.xlu1 %454 }
  0xe1   : > { %v476_v20 = vmul.f32 %v1489_v38, %v455_v15  ;;  %761 = vmatpush.msra.mxu2 %v1117_v17  ;;  %v848_v17 = vld [vmem:[%s1892_s5 + $0x58] sm:$0xff] }
  0xe3   : > { %v492_v25 = vadd.f32 %v476_v20, %v394_v21  ;;  %762 = vmatpush.msra.mxu2 %v1116_v18 }
  0xe4   : > { %v1193_v35 = vpop.eup %1192 }
  0xe5   : > { %v512_v31 = vadd.f32 %v1495_v41, %v492_v25  ;;  %763 = vmatpush.msra.mxu2 %v1115_v19  ;;  %v1112_v25 = vld [vmem:[%s1890_s3 + $0x128] sm:$0xff] }
  0xe7   : > { %1194 = vtanh.f32 %v512_v31  ;;  %764 = vmatpush.msra.mxu2 %v1114_v23  ;;  %v1109_v31 = vld [vmem:[%s1890_s3 + $0x110] sm:$0xff]  ;;  %v845_v23 = vld [vmem:[%s1892_s5 + $0x40] sm:$0xff] }
  0xe8   : > { %596 = vmatmul.f32.gmra.mxu0 %v1187_v3  ;;  %v459_v30 = vpop.permute.xlu1 %458 }
  0xe9   : > { %v477_v33 = vmul.f32 %v1489_v38, %v459_v30  ;;  %765 = vmatpush.msra.mxu2 %v1113_v24  ;;  %v1110_v30 = vld [vmem:[%s1890_s3 + $0x118] sm:$0xff] }
  0xea   : > { %v844_v24 = vld [vmem:[%s1892_s5 + $0x38] sm:$0xff] }
  0xeb   : > { %v493_v37 = vadd.f32 %v477_v33, %v395_v32  ;;  %766 = vmatpush.msra.mxu2 %v1112_v25  ;;  %v1108_v32 = vld [vmem:[%s1890_s3 + $0x108] sm:$0xff]  ;;  %v1107_v33 = vld [vmem:[%s1890_s3 + $0x100] sm:$0xff]  ;;  %v843_v25 = vld [vmem:[%s1892_s5 + $0x30] sm:$0xff] }
  0xed   : > { %v1195_v39 = vpop.eup %1194  ;;  %v513_v40 = vadd.f32 %v1495_v41, %v493_v37  ;;  %767 = vmatpush.msra.mxu2 %v1111_v26 }
  0xef   : > { %1196 = vtanh.f32 %v513_v40  ;;  %768 = vmatpush.msra.mxu2 %v1110_v30  ;;  %v841_v30 = vld [vmem:[%s1892_s5 + $0x20] sm:$0xff] }
  0xf0   : > { %599 = vmatmul.f32.gmra.mxu0 %v1189_v13 }
  0xf1   : > { %769 = vmatpush.msra.mxu2 %v1109_v31  ;;  %v840_v31 = vld [vmem:[%s1892_s5 + $0x18] sm:$0xff] }
  0xf3   : > { %770 = vmatpush.msra.mxu2 %v1108_v32 }
  0xf5   : > { %v1197_v42 = vpop.eup %1196  ;;  %771 = vmatpush.msra.mxu2 %v1107_v33  ;;  %v839_v33 = vld [vmem:[%s1892_s5 + $0x10] sm:$0xff] }
  0xf8   : > { %602 = vmatmul.f32.gmra.mxu0 %v1191_v22 }
 0x100   : > { %605 = vmatmul.f32.gmra.mxu0 %v1193_v35 }
 0x108   : > { %608 = vmatmul.f32.gmra.mxu0 %v1195_v39 }
 0x110   : > { %611 = vmatmul.f32.gmra.mxu0 %v1197_v42 }
 0x115   : > { %v567_v38 = vpop.f32.mrf.mxu0 }
 0x116   : > { %v568_v43 = vadd.f32 %v1595_v36, %v567_v38 }
 0x118   : > { %1198 = vtanh.f32 %v568_v43  ;;  %v1664_v43 = vld [vmem:[%s1891_s4 + $0x1] ss:$0 sm:$0xff] }
 0x11d   : > { %v570_v44 = vpop.f32.mrf.mxu0 }
 0x11e   : > { %v1199_v45 = vpop.eup %1198  ;;  %v571_v46 = vadd.f32 %v1595_v36, %v570_v44 }
 0x11f   : > { %669 = vmatmul.f32.vlgmr.msra.gmra.mxu1 %v1199_v45 }
 0x120   : > { %1200 = vtanh.f32 %v571_v46 }
 0x125   : > { %v573_v41 = vpop.f32.mrf.mxu0 }
 0x126   : > { %v1201_v47 = vpop.eup %1200  ;;  %v574_v48 = vadd.f32 %v1595_v36, %v573_v41 }
 0x127   : > { %672 = vmatmul.f32.gmra.mxu1 %v1201_v47 }
 0x128   : > { %1202 = vtanh.f32 %v574_v48 }
 0x12d   : > { %v576_v49 = vpop.f32.mrf.mxu0 }
 0x12e   : > { %v1203_v50 = vpop.eup %1202  ;;  %v577_v51 = vadd.f32 %v1595_v36, %v576_v49 }
 0x12f   : > { %675 = vmatmul.f32.gmra.mxu1 %v1203_v50 }
 0x130   : > { %1204 = vtanh.f32 %v577_v51 }
 0x135   : > { %v579_v52 = vpop.f32.mrf.mxu0 }
 0x136   : > { %v1205_v53 = vpop.eup %1204  ;;  %v580_v54 = vadd.f32 %v1595_v36, %v579_v52 }
 0x137   : > { %678 = vmatmul.f32.gmra.mxu1 %v1205_v53 }
 0x138   : > { %1206 = vtanh.f32 %v580_v54 }
 0x13d   : > { %v582_v55 = vpop.f32.mrf.mxu0 }
 0x13e   : > { %v1207_v56 = vpop.eup %1206  ;;  %v583_v57 = vadd.f32 %v1595_v36, %v582_v55 }
 0x13f   : > { %681 = vmatmul.f32.gmra.mxu1 %v1207_v56 }
 0x140   : > { %1208 = vtanh.f32 %v583_v57 }
 0x145   : > { %v585_v58 = vpop.f32.mrf.mxu0 }
 0x146   : > { %v1209_v59 = vpop.eup %1208  ;;  %v586_v60 = vadd.f32 %v1595_v36, %v585_v58 }
 0x147   : > { %684 = vmatmul.f32.gmra.mxu1 %v1209_v59 }
 0x148   : > { %1210 = vtanh.f32 %v586_v60 }
 0x14d   : > { %v588_v61 = vpop.f32.mrf.mxu0 }
 0x14e   : > { %v1211_v62 = vpop.eup %1210  ;;  %v589_v63 = vadd.f32 %v1595_v36, %v588_v61 }
 0x14f   : > { %687 = vmatmul.f32.gmra.mxu1 %v1211_v62 }
 0x150   : > { %1212 = vtanh.f32 %v589_v63 }
 0x155   : > { %v591_v0 = vpop.f32.mrf.mxu0 }
 0x156   : > { %v1213_v1 = vpop.eup %1212  ;;  %v592_v2 = vadd.f32 %v1595_v36, %v591_v0 }
 0x157   : > { %690 = vmatmul.f32.gmra.mxu1 %v1213_v1 }
 0x158   : > { %1214 = vtanh.f32 %v592_v2 }
 0x15d   : > { %v594_v3 = vpop.f32.mrf.mxu0 }
 0x15e   : > { %v1215_v4 = vpop.eup %1214  ;;  %v595_v5 = vadd.f32 %v1595_v36, %v594_v3 }
 0x15f   : > { %693 = vmatmul.f32.gmra.mxu1 %v1215_v4 }
 0x160   : > { %1216 = vtanh.f32 %v595_v5 }
 0x165   : > { %v597_v6 = vpop.f32.mrf.mxu0 }
 0x166   : > { %v1217_v7 = vpop.eup %1216  ;;  %v598_v8 = vadd.f32 %v1595_v36, %v597_v6 }
 0x167   : > { %696 = vmatmul.f32.gmra.mxu1 %v1217_v7 }
 0x168   : > { %1218 = vtanh.f32 %v598_v8 }
 0x16d   : > { %v600_v13 = vpop.f32.mrf.mxu0 }
 0x16e   : > { %v1219_v14 = vpop.eup %1218  ;;  %v601_v15 = vadd.f32 %v1595_v36, %v600_v13 }
 0x16f   : > { %699 = vmatmul.f32.gmra.mxu1 %v1219_v14  ;;  %v851_v14 = vld [vmem:[%s1892_s5 + $0x70] sm:$0xff] }
 0x170   : > { %1220 = vtanh.f32 %v601_v15  ;;  %858 = vmatpush.msra.mxu3 %v851_v14  ;;  %v850_v15 = vld [vmem:[%s1892_s5 + $0x68] sm:$0xff] }
 0x172   : > { %859 = vmatpush.msra.mxu3 %v850_v15 }
 0x174   : > { %860 = vmatpush.msra.mxu3 %v849_v16 }
 0x175   : > { %v603_v20 = vpop.f32.mrf.mxu0 }
 0x176   : > { %v1221_v21 = vpop.eup %1220  ;;  %v604_v22 = vadd.f32 %v1595_v36, %v603_v20  ;;  %861 = vmatpush.msra.mxu3 %v848_v17 }
 0x177   : > { %702 = vmatmul.f32.gmra.mxu1 %v1221_v21  ;;  %v847_v21 = vld [vmem:[%s1892_s5 + $0x50] sm:$0xff] }
 0x178   : > { %1222 = vtanh.f32 %v604_v22  ;;  %862 = vmatpush.msra.mxu3 %v847_v21  ;;  %v846_v22 = vld [vmem:[%s1892_s5 + $0x48] sm:$0xff] }
 0x17a   : > { %863 = vmatpush.msra.mxu3 %v846_v22 }
 0x17c   : > { %864 = vmatpush.msra.mxu3 %v845_v23 }
 0x17d   : > { %v606_v27 = vpop.f32.mrf.mxu0 }
 0x17e   : > { %v1223_v28 = vpop.eup %1222  ;;  %v607_v29 = vadd.f32 %v1595_v36, %v606_v27  ;;  %865 = vmatpush.msra.mxu3 %v844_v24 }
 0x17f   : > { %705 = vmatmul.f32.gmra.mxu1 %v1223_v28 }
 0x180   : > { %1224 = vtanh.f32 %v607_v29  ;;  %v842_v29 = vld [vmem:[%s1892_s5 + $0x28] sm:$0xff]  ;;  %866 = vmatpush.msra.mxu3 %v843_v25 }
 0x182   : > { %867 = vmatpush.msra.mxu3 %v842_v29 }
 0x184   : > { %868 = vmatpush.msra.mxu3 %v841_v30  ;;  %v938_v30 = vlaneseq }
 0x185   : > { %v609_v34 = vpop.f32.mrf.mxu0 }
 0x186   : > { %v1225_v35 = vpop.eup %1224  ;;  %v610_v37 = vadd.f32 %v1595_v36, %v609_v34  ;;  %869 = vmatpush.msra.mxu3 %v840_v31  ;;  %v1757_v31 = vand.u32 127, %v938_v30 }
 0x187   : > { %708 = vmatmul.f32.gmra.mxu1 %v1225_v35 }
 0x188   : > { %1226 = vtanh.f32 %v610_v37  ;;  %v838_v37 = vld [vmem:[%s1892_s5 + $0x8] sm:$0xff]  ;;  %870 = vmatpush.msra.mxu3 %v839_v33  ;;  %vm972_vm0 = vcmp.eq.s32.totalorder %v1757_v31, 0  ;;  %vm973_vm1 = vcmp.eq.s32.totalorder %v1757_v31, 2  ;;  %vm975_vm2 = vcmp.eq.s32.totalorder %v1757_v31, 1 }
 0x189   : > { %vm1763_vm3 = vmor %vm972_vm0, %vm973_vm1 }
 0x18a   : > { %871 = vmatpush.msra.mxu3 %v838_v37 }
 0x18d   : > { %v612_v39 = vpop.f32.mrf.mxu0 }
 0x18e   : > { %v1227_v40 = vpop.eup %1226  ;;  %v613_v42 = vadd.f32 %v1595_v36, %v612_v39  ;;  %v837_v39 = vld [vmem:[%s1892_s5] sm:$0xff] }
 0x18f   : > { %711 = vmatmul.f32.gmra.mxu1 %v1227_v40  ;;  %872 = vmatpush.msra.mxu3 %v837_v39 }
 0x190   : > { %1228 = vtanh.f32 %v613_v42 }
 0x196   : > { %v1229_v38 = vpop.eup %1228 }
 0x197   : > { %714 = vmatmul.f32.gmra.mxu1 %v1229_v38 }
 0x19c   : > { %v670_v44 = vpop.f32.mrf.mxu1 }
 0x19d   : > { %v671_v45 = vadd.f32 %v1664_v43, %v670_v44 }
 0x19f   : > { %1230 = vtanh.f32 %v671_v45  ;;  %v1733_v45 = vld [vmem:[%s1891_s4 + $0x2] ss:$0 sm:$0xff] }
 0x1a4   : > { %v673_v46 = vpop.f32.mrf.mxu1 }
 0x1a5   : > { %v1231_v41 = vpop.eup %1230  ;;  %v674_v47 = vadd.f32 %v1664_v43, %v673_v46 }
 0x1a6   : > { %772 = vmatmul.f32.vlgmr.msra.gmra.mxu2 %v1231_v41 }
 0x1a7   : > { %1232 = vtanh.f32 %v674_v47 }
 0x1ac   : > { %v676_v36 = vpop.f32.mrf.mxu1 }
 0x1ad   : > { %v1233_v48 = vpop.eup %1232  ;;  %v677_v49 = vadd.f32 %v1664_v43, %v676_v36 }
 0x1ae   : > { %775 = vmatmul.f32.gmra.mxu2 %v1233_v48 }
 0x1af   : > { %1234 = vtanh.f32 %v677_v49 }
 0x1b4   : > { %v679_v50 = vpop.f32.mrf.mxu1 }
 0x1b5   : > { %v1235_v51 = vpop.eup %1234  ;;  %v680_v52 = vadd.f32 %v1664_v43, %v679_v50 }
 0x1b6   : > { %778 = vmatmul.f32.gmra.mxu2 %v1235_v51 }
 0x1b7   : > { %1236 = vtanh.f32 %v680_v52 }
 0x1bc   : > { %v682_v53 = vpop.f32.mrf.mxu1 }
 0x1bd   : > { %v1237_v54 = vpop.eup %1236  ;;  %v683_v55 = vadd.f32 %v1664_v43, %v682_v53 }
 0x1be   : > { %781 = vmatmul.f32.gmra.mxu2 %v1237_v54 }
 0x1bf   : > { %1238 = vtanh.f32 %v683_v55 }
 0x1c4   : > { %v685_v56 = vpop.f32.mrf.mxu1 }
 0x1c5   : > { %v1239_v57 = vpop.eup %1238  ;;  %v686_v58 = vadd.f32 %v1664_v43, %v685_v56 }
 0x1c6   : > { %784 = vmatmul.f32.gmra.mxu2 %v1239_v57 }
 0x1c7   : > { %1240 = vtanh.f32 %v686_v58 }
 0x1cc   : > { %v688_v59 = vpop.f32.mrf.mxu1 }
 0x1cd   : > { %v1241_v60 = vpop.eup %1240  ;;  %v689_v61 = vadd.f32 %v1664_v43, %v688_v59 }
 0x1ce   : > { %787 = vmatmul.f32.gmra.mxu2 %v1241_v60 }
 0x1cf   : > { %1242 = vtanh.f32 %v689_v61 }
 0x1d4   : > { %v691_v62 = vpop.f32.mrf.mxu1 }
 0x1d5   : > { %v1243_v63 = vpop.eup %1242  ;;  %v692_v0 = vadd.f32 %v1664_v43, %v691_v62 }
 0x1d6   : > { %790 = vmatmul.f32.gmra.mxu2 %v1243_v63 }
 0x1d7   : > { %1244 = vtanh.f32 %v692_v0 }
 0x1dc   : > { %v694_v1 = vpop.f32.mrf.mxu1 }
 0x1dd   : > { %v1245_v2 = vpop.eup %1244  ;;  %v695_v3 = vadd.f32 %v1664_v43, %v694_v1 }
 0x1de   : > { %793 = vmatmul.f32.gmra.mxu2 %v1245_v2 }
 0x1df   : > { %1246 = vtanh.f32 %v695_v3 }
 0x1e4   : > { %v697_v4 = vpop.f32.mrf.mxu1 }
 0x1e5   : > { %v1247_v5 = vpop.eup %1246  ;;  %v698_v6 = vadd.f32 %v1664_v43, %v697_v4 }
 0x1e6   : > { %796 = vmatmul.f32.gmra.mxu2 %v1247_v5 }
 0x1e7   : > { %1248 = vtanh.f32 %v698_v6 }
 0x1ec   : > { %v700_v7 = vpop.f32.mrf.mxu1 }
 0x1ed   : > { %v1249_v8 = vpop.eup %1248  ;;  %v701_v9 = vadd.f32 %v1664_v43, %v700_v7 }
 0x1ee   : > { %799 = vmatmul.f32.gmra.mxu2 %v1249_v8 }
 0x1ef   : > { %1250 = vtanh.f32 %v701_v9 }
 0x1f4   : > { %v703_v11 = vpop.f32.mrf.mxu1 }
 0x1f5   : > { %v1251_v12 = vpop.eup %1250  ;;  %v704_v13 = vadd.f32 %v1664_v43, %v703_v11 }
 0x1f6   : > { %802 = vmatmul.f32.gmra.mxu2 %v1251_v12 }
 0x1f7   : > { %1252 = vtanh.f32 %v704_v13 }
 0x1fc   : > { %v706_v18 = vpop.f32.mrf.mxu1 }
 0x1fd   : > { %v1253_v19 = vpop.eup %1252  ;;  %v707_v20 = vadd.f32 %v1664_v43, %v706_v18 }
 0x1fe   : > { %805 = vmatmul.f32.gmra.mxu2 %v1253_v19 }
 0x1ff   : > { %1254 = vtanh.f32 %v707_v20 }
 0x204   : > { %v709_v26 = vpop.f32.mrf.mxu1 }
 0x205   : > { %v1255_v27 = vpop.eup %1254  ;;  %v710_v28 = vadd.f32 %v1664_v43, %v709_v26 }
 0x206   : > { %808 = vmatmul.f32.gmra.mxu2 %v1255_v27  ;;  %v1754_v27 = vld [vmem:[%s1893_s6] ss:$0 sm:$0xff] }
 0x207   : > { %1256 = vtanh.f32 %v710_v28 }
 0x20c   : > { %v712_v32 = vpop.f32.mrf.mxu1 }
 0x20d   : > { %v1257_v34 = vpop.eup %1256  ;;  %v713_v35 = vadd.f32 %v1664_v43, %v712_v32 }
 0x20e   : > { %811 = vmatmul.f32.gmra.mxu2 %v1257_v34 }
 0x20f   : > { %1258 = vtanh.f32 %v713_v35 }
 0x214   : > { %v715_v40 = vpop.f32.mrf.mxu1 }
 0x215   : > { %v1259_v42 = vpop.eup %1258  ;;  %v716_v38 = vadd.f32 %v1664_v43, %v715_v40 }
 0x216   : > { %814 = vmatmul.f32.gmra.mxu2 %v1259_v42 }
 0x217   : > { %1260 = vtanh.f32 %v716_v38 }
 0x21d   : > { %v1261_v44 = vpop.eup %1260 }
 0x21e   : > { %817 = vmatmul.f32.gmra.mxu2 %v1261_v44 }
 0x229   : > { %v773_v46 = vpop.f32.mrf.mxu2 }
 0x22a   : > { %v774_v41 = vadd.f32 %v1733_v45, %v773_v46 }
 0x22c   : > { %1262 = vtanh.f32 %v774_v41 }
 0x231   : > { %v776_v47 = vpop.f32.mrf.mxu2 }
 0x232   : > { %v1263_v36 = vpop.eup %1262  ;;  %v777_v48 = vadd.f32 %v1733_v45, %v776_v47 }
 0x233   : > { %873 = vmatmul.f32.vlgmr.msra.gmra.mxu3 %v1263_v36 }
 0x234   : > { %1264 = vtanh.f32 %v777_v48 }
 0x239   : > { %v779_v43 = vpop.f32.mrf.mxu2 }
 0x23a   : > { %v1265_v49 = vpop.eup %1264  ;;  %v780_v50 = vadd.f32 %v1733_v45, %v779_v43 }
 0x23b   : > { %876 = vmatmul.f32.gmra.mxu3 %v1265_v49 }
 0x23c   : > { %1266 = vtanh.f32 %v780_v50 }
 0x241   : > { %v782_v51 = vpop.f32.mrf.mxu2 }
 0x242   : > { %v1267_v52 = vpop.eup %1266  ;;  %v783_v53 = vadd.f32 %v1733_v45, %v782_v51 }
 0x243   : > { %879 = vmatmul.f32.gmra.mxu3 %v1267_v52 }
 0x244   : > { %1268 = vtanh.f32 %v783_v53 }
 0x249   : > { %v785_v54 = vpop.f32.mrf.mxu2 }
 0x24a   : > { %v1269_v55 = vpop.eup %1268  ;;  %v786_v56 = vadd.f32 %v1733_v45, %v785_v54 }
 0x24b   : > { %882 = vmatmul.f32.gmra.mxu3 %v1269_v55 }
 0x24c   : > { %1270 = vtanh.f32 %v786_v56 }
 0x251   : > { %v788_v57 = vpop.f32.mrf.mxu2 }
 0x252   : > { %v1271_v58 = vpop.eup %1270  ;;  %v789_v59 = vadd.f32 %v1733_v45, %v788_v57 }
 0x253   : > { %885 = vmatmul.f32.gmra.mxu3 %v1271_v58 }
 0x254   : > { %1272 = vtanh.f32 %v789_v59 }
 0x259   : > { %v791_v60 = vpop.f32.mrf.mxu2 }
 0x25a   : > { %v1273_v61 = vpop.eup %1272  ;;  %v792_v62 = vadd.f32 %v1733_v45, %v791_v60 }
 0x25b   : > { %888 = vmatmul.f32.gmra.mxu3 %v1273_v61 }
 0x25c   : > { %1274 = vtanh.f32 %v792_v62 }
 0x261   : > { %v794_v63 = vpop.f32.mrf.mxu2 }
 0x262   : > { %v1275_v0 = vpop.eup %1274  ;;  %v795_v1 = vadd.f32 %v1733_v45, %v794_v63 }
 0x263   : > { %891 = vmatmul.f32.gmra.mxu3 %v1275_v0 }
 0x264   : > { %1276 = vtanh.f32 %v795_v1 }
 0x269   : > { %v797_v2 = vpop.f32.mrf.mxu2 }
 0x26a   : > { %v1277_v3 = vpop.eup %1276  ;;  %v798_v4 = vadd.f32 %v1733_v45, %v797_v2 }
 0x26b   : > { %894 = vmatmul.f32.gmra.mxu3 %v1277_v3 }
 0x26c   : > { %1278 = vtanh.f32 %v798_v4 }
 0x271   : > { %v800_v5 = vpop.f32.mrf.mxu2 }
 0x272   : > { %v1279_v6 = vpop.eup %1278  ;;  %v801_v7 = vadd.f32 %v1733_v45, %v800_v5 }
 0x273   : > { %897 = vmatmul.f32.gmra.mxu3 %v1279_v6 }
 0x274   : > { %1280 = vtanh.f32 %v801_v7 }
 0x279   : > { %v803_v8 = vpop.f32.mrf.mxu2 }
 0x27a   : > { %v1281_v9 = vpop.eup %1280  ;;  %v804_v10 = vadd.f32 %v1733_v45, %v803_v8 }
 0x27b   : > { %900 = vmatmul.f32.gmra.mxu3 %v1281_v9 }
 0x27c   : > { %1282 = vtanh.f32 %v804_v10 }
 0x281   : > { %v806_v11 = vpop.f32.mrf.mxu2 }
 0x282   : > { %v1283_v12 = vpop.eup %1282  ;;  %v807_v13 = vadd.f32 %v1733_v45, %v806_v11 }
 0x283   : > { %903 = vmatmul.f32.gmra.mxu3 %v1283_v12 }
 0x284   : > { %1284 = vtanh.f32 %v807_v13 }
 0x289   : > { %v809_v14 = vpop.f32.mrf.mxu2 }
 0x28a   : > { %v1285_v15 = vpop.eup %1284  ;;  %v810_v16 = vadd.f32 %v1733_v45, %v809_v14 }
 0x28b   : > { %906 = vmatmul.f32.gmra.mxu3 %v1285_v15 }
 0x28c   : > { %1286 = vtanh.f32 %v810_v16 }
 0x291   : > { %v812_v17 = vpop.f32.mrf.mxu2 }
 0x292   : > { %v1287_v18 = vpop.eup %1286  ;;  %v813_v19 = vadd.f32 %v1733_v45, %v812_v17 }
 0x293   : > { %909 = vmatmul.f32.gmra.mxu3 %v1287_v18 }
 0x294   : > { %1288 = vtanh.f32 %v813_v19 }
 0x299   : > { %v815_v20 = vpop.f32.mrf.mxu2 }
 0x29a   : > { %v1289_v21 = vpop.eup %1288  ;;  %v816_v22 = vadd.f32 %v1733_v45, %v815_v20 }
 0x29b   : > { %912 = vmatmul.f32.gmra.mxu3 %v1289_v21 }
 0x29c   : > { %1290 = vtanh.f32 %v816_v22 }
 0x2a1   : > { %v818_v23 = vpop.f32.mrf.mxu2 }
 0x2a2   : > { %v1291_v24 = vpop.eup %1290  ;;  %v819_v25 = vadd.f32 %v1733_v45, %v818_v23 }
 0x2a3   : > { %915 = vmatmul.f32.gmra.mxu3 %v1291_v24 }
 0x2a4   : > { %1292 = vtanh.f32 %v819_v25 }
 0x2aa   : > { %v1293_v26 = vpop.eup %1292 }
 0x2ab   : > { %918 = vmatmul.f32.gmra.mxu3 %v1293_v26 }
 0x2b6   : > { %v874_v28 = vpop.f32.mrf.mxu3 }
 0x2b7   : > { %v875_v29 = vadd.f32 %v1754_v27, %v874_v28 }
 0x2b9   : > { %1294 = vtanh.f32 %v875_v29 }
 0x2be   : > { %v877_v32 = vpop.f32.mrf.mxu3 }
 0x2bf   : > { %v1295_v33 = vpop.eup %1294  ;;  %v878_v34 = vadd.f32 %v1754_v27, %v877_v32 }
 0x2c0   : > { %v940_v35 = vmul.f32 0.5, %v1295_v33  ;;  %v976_v40 = vsel %vm975_vm2, %v1295_v33, 0.0 }
 0x2c1   : > { %1296 = vtanh.f32 %v878_v34 }
 0x2c2   : > { %v956_v39 = vadd.f32 0.5, %v940_v35 }
 0x2c4   : > { %v992_v42 = vsel %vm1763_vm3, %v956_v39, %v976_v40 }
 0x2c5   : > { %1009 = vst.msk [vmem:[%s1772_s13] sm:$0xff] %vm1008_vm4, %v992_v42 }
 0x2c6   : > { %v880_v38 = vpop.f32.mrf.mxu3 }
 0x2c7   : > { %v1297_v44 = vpop.eup %1296  ;;  %v881_v45 = vadd.f32 %v1754_v27, %v880_v38 }
 0x2c8   : > { %v941_v46 = vmul.f32 0.5, %v1297_v44  ;;  %v977_v47 = vsel %vm975_vm2, %v1297_v44, 0.0 }
 0x2c9   : > { %1298 = vtanh.f32 %v881_v45 }
 0x2ca   : > { %v957_v41 = vadd.f32 0.5, %v941_v46 }
 0x2cc   : > { %v993_v36 = vsel %vm1763_vm3, %v957_v41, %v977_v47 }
 0x2cd   : > { %1010 = vst.msk [vmem:[%s1772_s13 + $0x8] sm:$0xff] %vm1008_vm4, %v993_v36 }
 0x2ce   : > { %v883_v48 = vpop.f32.mrf.mxu3 }
 0x2cf   : > { %v1299_v43 = vpop.eup %1298  ;;  %v884_v49 = vadd.f32 %v1754_v27, %v883_v48 }
 0x2d0   : > { %v942_v50 = vmul.f32 0.5, %v1299_v43  ;;  %v978_v52 = vsel %vm975_vm2, %v1299_v43, 0.0 }
 0x2d1   : > { %1300 = vtanh.f32 %v884_v49 }
 0x2d2   : > { %v958_v51 = vadd.f32 0.5, %v942_v50 }
 0x2d4   : > { %v994_v53 = vsel %vm1763_vm3, %v958_v51, %v978_v52 }
 0x2d5   : > { %1011 = vst.msk [vmem:[%s1772_s13 + $0x10] sm:$0xff] %vm1008_vm4, %v994_v53 }
 0x2d6   : > { %v886_v54 = vpop.f32.mrf.mxu3 }
 0x2d7   : > { %v1301_v55 = vpop.eup %1300  ;;  %v887_v56 = vadd.f32 %v1754_v27, %v886_v54 }
 0x2d8   : > { %v943_v57 = vmul.f32 0.5, %v1301_v55  ;;  %v979_v59 = vsel %vm975_vm2, %v1301_v55, 0.0 }
 0x2d9   : > { %1302 = vtanh.f32 %v887_v56 }
 0x2da   : > { %v959_v58 = vadd.f32 0.5, %v943_v57 }
 0x2dc   : > { %v995_v60 = vsel %vm1763_vm3, %v959_v58, %v979_v59 }
 0x2dd   : > { %1012 = vst.msk [vmem:[%s1772_s13 + $0x18] sm:$0xff] %vm1008_vm4, %v995_v60 }
 0x2de   : > { %v889_v61 = vpop.f32.mrf.mxu3 }
 0x2df   : > { %v1303_v62 = vpop.eup %1302  ;;  %v890_v63 = vadd.f32 %v1754_v27, %v889_v61 }
 0x2e0   : > { %v944_v0 = vmul.f32 0.5, %v1303_v62  ;;  %v980_v2 = vsel %vm975_vm2, %v1303_v62, 0.0 }
 0x2e1   : > { %1304 = vtanh.f32 %v890_v63 }
 0x2e2   : > { %v960_v1 = vadd.f32 0.5, %v944_v0 }
 0x2e4   : > { %v996_v3 = vsel %vm1763_vm3, %v960_v1, %v980_v2 }
 0x2e5   : > { %1013 = vst.msk [vmem:[%s1772_s13 + $0x20] sm:$0xff] %vm1008_vm4, %v996_v3 }
 0x2e6   : > { %v892_v4 = vpop.f32.mrf.mxu3 }
 0x2e7   : > { %v1305_v5 = vpop.eup %1304  ;;  %v893_v6 = vadd.f32 %v1754_v27, %v892_v4 }
 0x2e8   : > { %v945_v7 = vmul.f32 0.5, %v1305_v5  ;;  %v981_v9 = vsel %vm975_vm2, %v1305_v5, 0.0 }
 0x2e9   : > { %1306 = vtanh.f32 %v893_v6 }
 0x2ea   : > { %v961_v8 = vadd.f32 0.5, %v945_v7 }
 0x2ec   : > { %v997_v10 = vsel %vm1763_vm3, %v961_v8, %v981_v9 }
 0x2ed   : > { %1014 = vst.msk [vmem:[%s1772_s13 + $0x28] sm:$0xff] %vm1008_vm4, %v997_v10 }
 0x2ee   : > { %v895_v11 = vpop.f32.mrf.mxu3 }
 0x2ef   : > { %v1307_v12 = vpop.eup %1306  ;;  %v896_v13 = vadd.f32 %v1754_v27, %v895_v11 }
 0x2f0   : > { %v946_v14 = vmul.f32 0.5, %v1307_v12  ;;  %v982_v16 = vsel %vm975_vm2, %v1307_v12, 0.0 }
 0x2f1   : > { %1308 = vtanh.f32 %v896_v13 }
 0x2f2   : > { %v962_v15 = vadd.f32 0.5, %v946_v14 }
 0x2f4   : > { %v998_v17 = vsel %vm1763_vm3, %v962_v15, %v982_v16 }
 0x2f5   : > { %1015 = vst.msk [vmem:[%s1772_s13 + $0x30] sm:$0xff] %vm1008_vm4, %v998_v17 }
 0x2f6   : > { %v898_v18 = vpop.f32.mrf.mxu3 }
 0x2f7   : > { %v1309_v19 = vpop.eup %1308  ;;  %v899_v20 = vadd.f32 %v1754_v27, %v898_v18 }
 0x2f8   : > { %v947_v21 = vmul.f32 0.5, %v1309_v19  ;;  %v983_v23 = vsel %vm975_vm2, %v1309_v19, 0.0 }
 0x2f9   : > { %1310 = vtanh.f32 %v899_v20 }
 0x2fa   : > { %v963_v22 = vadd.f32 0.5, %v947_v21 }
 0x2fc   : > { %v999_v24 = vsel %vm1763_vm3, %v963_v22, %v983_v23 }
 0x2fd   : > { %1016 = vst.msk [vmem:[%s1772_s13 + $0x38] sm:$0xff] %vm1008_vm4, %v999_v24 }
 0x2fe   : > { %v901_v25 = vpop.f32.mrf.mxu3 }
 0x2ff   : > { %v1311_v26 = vpop.eup %1310  ;;  %v902_v28 = vadd.f32 %v1754_v27, %v901_v25 }
 0x300   : > { %v948_v29 = vmul.f32 0.5, %v1311_v26  ;;  %v984_v32 = vsel %vm975_vm2, %v1311_v26, 0.0 }
 0x301   : > { %1312 = vtanh.f32 %v902_v28 }
 0x302   : > { %v964_v30 = vadd.f32 0.5, %v948_v29 }
 0x304   : > { %v1000_v33 = vsel %vm1763_vm3, %v964_v30, %v984_v32 }
 0x305   : > { %1017 = vst.msk [vmem:[%s1772_s13 + $0x40] sm:$0xff] %vm1008_vm4, %v1000_v33 }
 0x306   : > { %v904_v34 = vpop.f32.mrf.mxu3 }
 0x307   : > { %v1313_v35 = vpop.eup %1312  ;;  %v905_v39 = vadd.f32 %v1754_v27, %v904_v34 }
 0x308   : > { %v949_v40 = vmul.f32 0.5, %v1313_v35  ;;  %v985_v38 = vsel %vm975_vm2, %v1313_v35, 0.0 }
 0x309   : > { %1314 = vtanh.f32 %v905_v39 }
 0x30a   : > { %v965_v42 = vadd.f32 0.5, %v949_v40 }
 0x30c   : > { %v1001_v44 = vsel %vm1763_vm3, %v965_v42, %v985_v38 }
 0x30d   : > { %1018 = vst.msk [vmem:[%s1772_s13 + $0x48] sm:$0xff] %vm1008_vm4, %v1001_v44 }
 0x30e   : > { %v907_v45 = vpop.f32.mrf.mxu3 }
 0x30f   : > { %v1315_v46 = vpop.eup %1314  ;;  %v908_v41 = vadd.f32 %v1754_v27, %v907_v45 }
 0x310   : > { %v950_v47 = vmul.f32 0.5, %v1315_v46  ;;  %v986_v48 = vsel %vm975_vm2, %v1315_v46, 0.0 }
 0x311   : > { %1316 = vtanh.f32 %v908_v41 }
 0x312   : > { %v966_v36 = vadd.f32 0.5, %v950_v47 }
 0x314   : > { %v1002_v43 = vsel %vm1763_vm3, %v966_v36, %v986_v48 }
 0x315   : > { %1019 = vst.msk [vmem:[%s1772_s13 + $0x50] sm:$0xff] %vm1008_vm4, %v1002_v43 }
 0x316   : > { %v910_v49 = vpop.f32.mrf.mxu3 }
 0x317   : > { %v1317_v50 = vpop.eup %1316  ;;  %v911_v51 = vadd.f32 %v1754_v27, %v910_v49 }
 0x318   : > { %v951_v52 = vmul.f32 0.5, %v1317_v50  ;;  %v987_v54 = vsel %vm975_vm2, %v1317_v50, 0.0 }
 0x319   : > { %1318 = vtanh.f32 %v911_v51 }
 0x31a   : > { %v967_v53 = vadd.f32 0.5, %v951_v52 }
 0x31c   : > { %v1003_v55 = vsel %vm1763_vm3, %v967_v53, %v987_v54 }
 0x31d   : > { %1020 = vst.msk [vmem:[%s1772_s13 + $0x58] sm:$0xff] %vm1008_vm4, %v1003_v55 }
 0x31e   : > { %v913_v56 = vpop.f32.mrf.mxu3 }
 0x31f   : > { %v1319_v57 = vpop.eup %1318  ;;  %v914_v58 = vadd.f32 %v1754_v27, %v913_v56 }
 0x320   : > { %v952_v59 = vmul.f32 0.5, %v1319_v57  ;;  %v988_v61 = vsel %vm975_vm2, %v1319_v57, 0.0 }
 0x321   : > { %1320 = vtanh.f32 %v914_v58 }
 0x322   : > { %v968_v60 = vadd.f32 0.5, %v952_v59 }
 0x324   : > { %v1004_v62 = vsel %vm1763_vm3, %v968_v60, %v988_v61 }
 0x325   : > { %1021 = vst.msk [vmem:[%s1772_s13 + $0x60] sm:$0xff] %vm1008_vm4, %v1004_v62 }
 0x326   : > { %v916_v63 = vpop.f32.mrf.mxu3 }
 0x327   : > { %v1321_v0 = vpop.eup %1320  ;;  %v917_v1 = vadd.f32 %v1754_v27, %v916_v63 }
 0x328   : > { %v953_v2 = vmul.f32 0.5, %v1321_v0  ;;  %v989_v4 = vsel %vm975_vm2, %v1321_v0, 0.0 }
 0x329   : > { %1322 = vtanh.f32 %v917_v1 }
 0x32a   : > { %v969_v3 = vadd.f32 0.5, %v953_v2 }
 0x32c   : > { %v1005_v5 = vsel %vm1763_vm3, %v969_v3, %v989_v4 }
 0x32d   : > { %1022 = vst.msk [vmem:[%s1772_s13 + $0x68] sm:$0xff] %vm1008_vm4, %v1005_v5 }
 0x32e   : > { %v919_v6 = vpop.f32.mrf.mxu3 }
 0x32f   : > { %v1323_v7 = vpop.eup %1322  ;;  %v920_v8 = vadd.f32 %v1754_v27, %v919_v6 }
 0x330   : > { %v954_v9 = vmul.f32 0.5, %v1323_v7  ;;  %v990_v11 = vsel %vm975_vm2, %v1323_v7, 0.0 }
 0x331   : > { %1324 = vtanh.f32 %v920_v8 }
 0x332   : > { %v970_v10 = vadd.f32 0.5, %v954_v9 }
 0x334   : > { %v1006_v12 = vsel %vm1763_vm3, %v970_v10, %v990_v11 }
 0x335   : > { %1023 = vst.msk [vmem:[%s1772_s13 + $0x70] sm:$0xff] %vm1008_vm4, %v1006_v12 }
 0x337   : > { %v1325_v13 = vpop.eup %1324 }
 0x338   : > { %v955_v14 = vmul.f32 0.5, %v1325_v13  ;;  %v991_v16 = vsel %vm975_vm2, %v1325_v13, 0.0 }
 0x33a   : > { %v971_v15 = vadd.f32 0.5, %v955_v14 }
 0x33c   : > { %v1007_v27 = vsel %vm1763_vm3, %v971_v15, %v991_v16 }
 0x33d   : > { %1024 = vst.msk [vmem:[%s1772_s13 + $0x78] sm:$0xff] %vm1008_vm4, %v1007_v27 }
 0x33e PF: > { %s17_s24 = sadd.s32 1, %s1332_s24  }
 0x33f   : > { %p14_p4 = scmp.ge.s32.totalorder %s17_s24, 4  }
 0x341   :  { %16 = sbr.rel (!%p14_p4) target bundleno = 1 (0x1), region = 82 }

</bundles_post_ra>
